<compile_context>
chip_gen: v6e
topology: v6e:2x2x1
jax: 0.10.0
libtpu: 0.0.40
codegen_flags: <defaults>
</compile_context>

<pallas_src>
import numpy as np
import jax
import jax.numpy as jnp
from jax import lax
from jax.experimental import pallas as pl
from jax.experimental.pallas import tpu as pltpu

_TEMPS = 6  # rough count of live f32 tile-sized temporaries in the kernel


def _round_up(x, m):
    return ((x + m - 1) // m) * m


def _sublane_align(dtype):
    # packing granularity on the sublane axis: 8 for 32-bit, 16 for bf16, 32 for int8
    return max(8, 32 // jnp.dtype(dtype).itemsize)


def _vmem_budget():
    """Generation-dependent (budget_for_double_buffered_inputs, vmem_limit)."""
    try:
        cap = int(pltpu.get_tpu_info().vmem_capacity_bytes)
    except Exception:
        cap = 64 * 1024 * 1024  # assume the smallest (v7x per-TensorCore VMEM)
    budget = min(cap // 4, 24 * 1024 * 1024)   # v7x: 16 MiB, v5e/v6e: 24 MiB
    limit = min(cap // 2, 64 * 1024 * 1024)    # v7x: 32 MiB, v5e/v6e: 64 MiB
    return budget, limit


def _make_kernel(reduce_axis, n_candidates):
    """Kernel body; reduce_axis is the candidate axis of the block."""

    def kernel(scores_ref, em_ref, out_ref):
        scores = scores_ref[...].astype(jnp.float32)
        # compare em in its native dtype (int8 / bf16 / f32) -> no per-element cast
        pos_mask = em_ref[...] >= 1
        neg_mask = jnp.logical_not(pos_mask)

        num_pos = jnp.sum(pos_mask.astype(jnp.float32),
                          axis=reduce_axis, keepdims=True)
        num_neg = jnp.float32(n_candidates) - num_pos      # saves one reduction

        # max over negatives per item (-inf when the item has no negatives)
        max_neg = jnp.max(jnp.where(neg_mask, scores, -jnp.inf),
                          axis=reduce_axis, keepdims=True)

        # Single exp per element; clip keeps it finite even when max_neg == -inf
        # (those items are invalid and masked out below).
        d = jnp.clip(scores - max_neg, -85.0, 85.0)
        e = jnp.exp(d)
        sum_neg = jnp.sum(jnp.where(neg_mask, e, 0.0),
                          axis=reduce_axis, keepdims=True)

        # lse over {s_p} U negatives, referenced to max_neg; clamp at 0 so the
        # clip can never yield a (tiny) negative per-positive loss.
        lse = max_neg + jnp.log(e + sum_neg)
        per_pos = jnp.maximum(lse - scores, 0.0)

        # CrossEntropyLoss (mean over positives) per item; exact divide.
        item_loss = (jnp.sum(jnp.where(pos_mask, per_pos, 0.0),
                             axis=reduce_axis, keepdims=True)
                     / jnp.maximum(num_pos, 1.0))

        valid = jnp.logical_and(num_pos > 0.0, num_neg > 0.0)
        # select (not multiply-by-mask) so invalid rows can never poison the sums
        tile_loss = jnp.sum(jnp.where(valid, item_loss, 0.0))
        tile_count = jnp.sum(valid.astype(jnp.float32))

        # Lane-dense (1, 8, 128) partial block: [0,0,0]=loss_sum, [0,0,1]=count.
        sub = lax.broadcasted_iota(jnp.int32, (1, 8, 128), 1)
        lane = lax.broadcasted_iota(jnp.int32, (1, 8, 128), 2)
        row0 = sub == 0
        out_ref[...] = jnp.where(row0 & (lane == 0), tile_loss,
                                 jnp.where(row0 & (lane == 1), tile_count, 0.0))

    return kernel


def fusion_retr_loss(batch_score, batch_em, reg_score=None, tile_b=None):
    """Forward loss of FusionRetrLoss via a batch-tiled Pallas TPU kernel.

    batch_score: [B, N] answer scores (f32 or bf16).
    batch_em:    [B, N] exact-match scores; positive iff >= 1.  May be passed
                 as int8 / bf16 to cut HBM bytes (exact for 0/1-valued em).
    reg_score:   optional list/array of scalars (opts['reg_score']).
    tile_b:      batch items per grid step; auto-sized from VMEM if None.
    Returns NaN when no batch item has both positives and negatives
    (the PyTorch module returns None there).
    """
    B, N = batch_score.shape
    assert batch_em.shape == (B, N)

    budget, vmem_limit = _vmem_budget()
    sd, ed = jnp.dtype(batch_score.dtype), jnp.dtype(batch_em.dtype)

    transposed = N < 128
    if transposed:
        # batch on lanes: block is (N, tile_b), tile_b must be a lane multiple
        lane_align = 128
        n_score = _round_up(N, _sublane_align(sd)) * sd.itemsize
        n_em = _round_up(N, _sublane_align(ed)) * ed.itemsize
        n_tmp = _TEMPS * _round_up(N, 8) * 4
        per_item = 2 * (n_score + n_em) + n_tmp   # x2 = input double-buffering
        cap = 8192
    else:
        # batch on sublanes: block is (tile_b, N); 32 covers int8 packing
        lane_align = 32
        n_score = _round_up(N, 128) * sd.itemsize
        n_em = _round_up(N, 128) * ed.itemsize
        n_tmp = _TEMPS * _round_up(N, 128) * 4
        per_item = 2 * (n_score + n_em) + n_tmp
        cap = 4096

    if tile_b is None:
        tile_b = budget // max(per_item, 1)
    tile_b = int(tile_b)
    tile_b = max(lane_align, min(cap, (tile_b // lane_align) * lane_align))
    tile_b = min(tile_b, _round_up(B, lane_align))
    # keep >= 2 (ideally 4) grid steps so the "parallel" axis feeds both v7x TCs
    if B >= 4 * lane_align:
        tile_b = min(tile_b, _round_up(-(-B // 4), lane_align))
    elif B >= 2 * lane_align:
        tile_b = min(tile_b, _round_up(-(-B // 2), lane_align))

    grid_b = -(-B // tile_b)
    padded_b = grid_b * tile_b
    pad = padded_b - B

    if transposed:
        scores = batch_score.T
        em = batch_em.T
        if pad:
            # padded items have em == 0 -> no positives -> skipped (== `continue`)
            scores = jnp.pad(scores, ((0, 0), (0, pad)))
            em = jnp.pad(em, ((0, 0), (0, pad)))
        block = (N, tile_b)
        index_map = lambda g: (0, g)
        reduce_axis = 0
    else:
        scores = batch_score
        em = batch_em
        if pad:
            scores = jnp.pad(scores, ((0, pad), (0, 0)))
            em = jnp.pad(em, ((0, pad), (0, 0)))
        block = (tile_b, N)
        index_map = lambda g: (g, 0)
        reduce_axis = 1

    partials = pl.pallas_call(
        _make_kernel(reduce_axis, N),
        out_shape=jax.ShapeDtypeStruct((grid_b, 8, 128), jnp.float32),
        grid_spec=pltpu.PrefetchScalarGridSpec(
            num_scalar_prefetch=0,
            grid=(grid_b,),
            in_specs=[pl.BlockSpec(block, index_map),
                      pl.BlockSpec(block, index_map)],
            out_specs=pl.BlockSpec((1, 8, 128), lambda g: (g, 0, 0)),
        ),
        compiler_params=pltpu.CompilerParams(
            dimension_semantics=("parallel",),   # megacore sharding on v7x
            vmem_limit_bytes=vmem_limit,
        ),
    )(scores, em)

    loss_sum = jnp.sum(partials[:, 0, 0])
    valid_count = jnp.sum(partials[:, 0, 1])
    loss = jnp.where(valid_count > 0,
                     loss_sum / jnp.maximum(valid_count, 1.0),
                     jnp.float32(jnp.nan))

    if reg_score is not None:
        # glue: torch.stack(reg_score_lst).mean() added to the loss
        loss = loss + jnp.mean(jnp.stack([jnp.asarray(r, jnp.float32)
                                          for r in reg_score]))
    return loss


def reference_loss(scores_np, em_np, reg=None):
    """Pure-numpy mirror of the PyTorch module for verification."""
    batch_loss, batch_num = 0.0, 0
    for b in range(scores_np.shape[0]):
        pos = [i for i in range(scores_np.shape[1]) if em_np[b, i] >= 1]
        neg = [i for i in range(scores_np.shape[1]) if em_np[b, i] < 1]
        if len(pos) == 0 or len(neg) == 0:
            continue
        item = 0.0
        for p in pos:
            row = np.array([scores_np[b, p]] + [scores_np[b, n] for n in neg],
                           dtype=np.float64)
            m = row.max()
            lse = m + np.log(np.sum(np.exp(row - m)))
            item += lse - row[0]
        batch_loss += item / len(pos)
        batch_num += 1
    if batch_num == 0:
        return None
    loss = batch_loss / batch_num
    if reg is not None:
        loss += float(np.mean(np.stack(reg)))
    return loss


if __name__ == "__main__":
    key = jax.random.PRNGKey(0)
    k1, k2, k3, k4, k5, k6 = jax.random.split(key, 6)

    # --- Test 1: tiny case, f32 scores + f32 em, transposed (N < 128) path ---
    B1, N1 = 2, 10
    score1 = jax.random.normal(k1, (B1, N1), dtype=jnp.float32)
    em1 = (jax.random.uniform(k2, (B1, N1)) > 0.6).astype(jnp.float32)
    em1 = em1.at[:, 0].set(1.0).at[:, 1].set(0.0)   # guarantee >=1 pos and >=1 neg
    loss1 = jax.block_until_ready(fusion_retr_loss(score1, em1))
    ref1 = reference_loss(np.asarray(score1), np.asarray(em1))
    assert ref1 is not None
    assert np.allclose(float(loss1), ref1, rtol=1e-4, atol=1e-4), (float(loss1), ref1)

    # --- Test 2: multi-tile transposed path, int8 em (HBM byte diet), batch
    #             padding, skipped items, reg_score glue ---
    B2, N2 = 300, 24
    score2 = jax.random.normal(k3, (B2, N2), dtype=jnp.float32)
    em2f = (jax.random.uniform(k4, (B2, N2)) > 0.7).astype(jnp.float32)
    em2f = em2f.at[0].set(1.0)                       # all-positive item -> skipped
    em2f = em2f.at[1].set(0.0)                       # all-negative item -> skipped
    em2f = em2f.at[2, 0].set(1.0).at[2, 1].set(0.0)  # guarantee one valid item
    em2 = em2f.astype(jnp.int8)                      # exact for 0/1 em values
    reg = [0.1, 0.2, 0.3]
    loss2 = jax.block_until_ready(
        fusion_retr_loss(score2, em2, reg_score=reg, tile_b=128))   # 3 grid steps
    ref2 = reference_loss(np.asarray(score2), np.asarray(em2f), reg=reg)
    assert ref2 is not None
    assert np.allclose(float(loss2), ref2, rtol=1e-4, atol=1e-4), (float(loss2), ref2)

    # --- Test 3: N >= 128 row-major path, int8 em ---
    B3, N3 = 16, 128
    score3 = jax.random.normal(k5, (B3, N3), dtype=jnp.float32)
    em3f = (jax.random.uniform(k6, (B3, N3)) > 0.8).astype(jnp.float32)
    em3f = em3f.at[:, 0].set(1.0).at[:, 1].set(0.0)
    em3 = em3f.astype(jnp.int8)
    loss3 = jax.block_until_ready(fusion_retr_loss(score3, em3))
    ref3 = reference_loss(np.asarray(score3), np.asarray(em3f))
    assert ref3 is not None
    assert np.allclose(float(loss3), ref3, rtol=1e-4, atol=1e-4), (float(loss3), ref3)

    print("KERNEL_OK")
</pallas_src>

<mosaic_0001>
module attributes {stable_mosaic.version = 11 : i64} {
  func.func @kernel(%arg0: i32, %arg1: memref<10x128xf32, #tpu.memory_space<vmem>>, %arg2: memref<10x128xf32, #tpu.memory_space<vmem>>, %arg3: memref<1x8x128xf32, #tpu.memory_space<vmem>>) attributes {dimension_semantics = [#tpu.dimension_semantics<parallel>], iteration_bounds = array<i64: 1>, scalar_prefetch = 0 : i64, scratch_operands = 0 : i64, tpu.core_type = #tpu.core_type<tc>, window_params = [{transform_indices = @transform_0, window_bounds = array<i64: 10, 128>}, {transform_indices = @transform_1, window_bounds = array<i64: 10, 128>}, {transform_indices = @transform_2, window_bounds = array<i64: 1, 8, 128>}]} {
    %c0 = arith.constant 0 : index
    %c0_0 = arith.constant 0 : index
    %0 = vector.load %arg1[%c0, %c0_0] : memref<10x128xf32, #tpu.memory_space<vmem>>, vector<10x128xf32>
    %c0_1 = arith.constant 0 : index
    %c0_2 = arith.constant 0 : index
    %1 = vector.load %arg2[%c0_1, %c0_2] : memref<10x128xf32, #tpu.memory_space<vmem>>, vector<10x128xf32>
    %cst = arith.constant 1.000000e+00 : f32
    %2 = vector.broadcast %cst : f32 to vector<10x128xf32>
    %3 = arith.cmpf oge, %1, %2 : vector<10x128xf32>
    %cst_3 = arith.constant dense<true> : vector<10x128xi1>
    %4 = arith.xori %3, %cst_3 : vector<10x128xi1>
    %5 = arith.extui %3 : vector<10x128xi1> to vector<10x128xi32>
    %6 = arith.sitofp %5 : vector<10x128xi32> to vector<10x128xf32>
    %cst_4 = arith.constant dense<0.000000e+00> : vector<128xf32>
    %7 = vector.multi_reduction <add>, %6, %cst_4 [0] : vector<10x128xf32> to vector<128xf32>
    %8 = vector.shape_cast %7 : vector<128xf32> to vector<1x128xf32>
    %cst_5 = arith.constant 1.000000e+01 : f32
    %9 = vector.broadcast %cst_5 : f32 to vector<1x128xf32>
    %10 = arith.subf %9, %8 : vector<1x128xf32>
    %cst_6 = arith.constant 0xFF800000 : f32
    %11 = vector.broadcast %cst_6 : f32 to vector<10x128xf32>
    %12 = arith.select %4, %0, %11 : vector<10x128xi1>, vector<10x128xf32>
    %cst_7 = arith.constant dense<0xFF800000> : vector<128xf32>
    %13 = vector.multi_reduction <maximumf>, %12, %cst_7 [0] : vector<10x128xf32> to vector<128xf32>
    %14 = vector.shape_cast %13 : vector<128xf32> to vector<1x128xf32>
    %15 = vector.broadcast %14 : vector<1x128xf32> to vector<10x128xf32>
    %16 = arith.subf %0, %15 : vector<10x128xf32>
    %cst_8 = arith.constant -8.500000e+01 : f32
    %cst_9 = arith.constant 8.500000e+01 : f32
    %17 = vector.broadcast %cst_8 : f32 to vector<10x128xf32>
    %18 = arith.maximumf %17, %16 : vector<10x128xf32>
    %19 = vector.broadcast %cst_9 : f32 to vector<10x128xf32>
    %20 = arith.minimumf %19, %18 : vector<10x128xf32>
    %21 = math.exp %20 : vector<10x128xf32>
    %cst_10 = arith.constant 0.000000e+00 : f32
    %22 = vector.broadcast %cst_10 : f32 to vector<10x128xf32>
    %23 = arith.select %4, %21, %22 : vector<10x128xi1>, vector<10x128xf32>
    %cst_11 = arith.constant dense<0.000000e+00> : vector<128xf32>
    %24 = vector.multi_reduction <add>, %23, %cst_11 [0] : vector<10x128xf32> to vector<128xf32>
    %25 = vector.shape_cast %24 : vector<128xf32> to vector<1x128xf32>
    %26 = vector.broadcast %25 : vector<1x128xf32> to vector<10x128xf32>
    %27 = arith.addf %21, %26 : vector<10x128xf32>
    %28 = math.log %27 : vector<10x128xf32>
    %29 = vector.broadcast %14 : vector<1x128xf32> to vector<10x128xf32>
    %30 = arith.addf %29, %28 : vector<10x128xf32>
    %31 = arith.subf %30, %0 : vector<10x128xf32>
    %cst_12 = arith.constant 0.000000e+00 : f32
    %32 = vector.broadcast %cst_12 : f32 to vector<10x128xf32>
    %33 = arith.maximumf %31, %32 : vector<10x128xf32>
    %cst_13 = arith.constant 0.000000e+00 : f32
    %34 = vector.broadcast %cst_13 : f32 to vector<10x128xf32>
    %35 = arith.select %3, %33, %34 : vector<10x128xi1>, vector<10x128xf32>
    %cst_14 = arith.constant dense<0.000000e+00> : vector<128xf32>
    %36 = vector.multi_reduction <add>, %35, %cst_14 [0] : vector<10x128xf32> to vector<128xf32>
    %37 = vector.shape_cast %36 : vector<128xf32> to vector<1x128xf32>
    %cst_15 = arith.constant 1.000000e+00 : f32
    %38 = vector.broadcast %cst_15 : f32 to vector<1x128xf32>
    %39 = arith.maximumf %8, %38 : vector<1x128xf32>
    %40 = arith.divf %37, %39 : vector<1x128xf32>
    %cst_16 = arith.constant 0.000000e+00 : f32
    %41 = vector.broadcast %cst_16 : f32 to vector<1x128xf32>
    %42 = arith.cmpf ogt, %8, %41 : vector<1x128xf32>
    %cst_17 = arith.constant 0.000000e+00 : f32
    %43 = vector.broadcast %cst_17 : f32 to vector<1x128xf32>
    %44 = arith.cmpf ogt, %10, %43 : vector<1x128xf32>
    %45 = arith.andi %42, %44 : vector<1x128xi1>
    %cst_18 = arith.constant 0.000000e+00 : f32
    %46 = vector.broadcast %cst_18 : f32 to vector<1x128xf32>
    %47 = arith.select %45, %40, %46 : vector<1x128xi1>, vector<1x128xf32>
    %48 = vector.shape_cast %47 : vector<1x128xf32> to vector<1x1x128xf32>
    %cst_19 = arith.constant dense<0.000000e+00> : vector<1xf32>
    %49 = vector.multi_reduction <add>, %48, %cst_19 [1, 2] : vector<1x1x128xf32> to vector<1xf32>
    %50 = vector.shape_cast %49 : vector<1xf32> to vector<1x1x1xf32>
    %51 = vector.extract %50[0, 0, 0] : f32 from vector<1x1x1xf32>
    %52 = arith.extui %45 : vector<1x128xi1> to vector<1x128xi32>
    %53 = arith.sitofp %52 : vector<1x128xi32> to vector<1x128xf32>
    %54 = vector.shape_cast %53 : vector<1x128xf32> to vector<1x1x128xf32>
    %cst_20 = arith.constant dense<0.000000e+00> : vector<1xf32>
    %55 = vector.multi_reduction <add>, %54, %cst_20 [1, 2] : vector<1x1x128xf32> to vector<1xf32>
    %56 = vector.shape_cast %55 : vector<1xf32> to vector<1x1x1xf32>
    %57 = vector.extract %56[0, 0, 0] : f32 from vector<1x1x1xf32>
    %58 = tpu.iota {dimensions = array<i32: 1>} : vector<1x8x128xi32>
    %59 = tpu.iota {dimensions = array<i32: 2>} : vector<1x8x128xi32>
    %c0_i32 = arith.constant 0 : i32
    %60 = vector.broadcast %c0_i32 : i32 to vector<1x8x128xi32>
    %61 = arith.cmpi eq, %58, %60 : vector<1x8x128xi32>
    %c0_i32_21 = arith.constant 0 : i32
    %62 = vector.broadcast %c0_i32_21 : i32 to vector<1x8x128xi32>
    %63 = arith.cmpi eq, %59, %62 : vector<1x8x128xi32>
    %64 = arith.andi %61, %63 : vector<1x8x128xi1>
    %c1_i32 = arith.constant 1 : i32
    %65 = vector.broadcast %c1_i32 : i32 to vector<1x8x128xi32>
    %66 = arith.cmpi eq, %59, %65 : vector<1x8x128xi32>
    %67 = arith.andi %61, %66 : vector<1x8x128xi1>
    %cst_22 = arith.constant 0.000000e+00 : f32
    %68 = vector.broadcast %57 : f32 to vector<1x8x128xf32>
    %69 = vector.broadcast %cst_22 : f32 to vector<1x8x128xf32>
    %70 = arith.select %67, %68, %69 : vector<1x8x128xi1>, vector<1x8x128xf32>
    %71 = vector.broadcast %51 : f32 to vector<1x8x128xf32>
    %72 = arith.select %64, %71, %70 : vector<1x8x128xi1>, vector<1x8x128xf32>
    %c0_23 = arith.constant 0 : index
    %c0_24 = arith.constant 0 : index
    %c0_25 = arith.constant 0 : index
    %73 = vector.load %arg3[%c0_23, %c0_24, %c0_25] : memref<1x8x128xf32, #tpu.memory_space<vmem>>, vector<1x8x128xf32>
    tpu.vector_store %arg3[%c0_23, %c0_24, %c0_25], %72 {strides = array<i32>} : memref<1x8x128xf32, #tpu.memory_space<vmem>>, vector<1x8x128xf32>,
    return
  }
  func.func @transform_0(%arg0: i32) -> (i32, i32) {
    %c0_i32 = arith.constant 0 : i32
    %c0_i32_0 = arith.constant 0 : i32
    return %c0_i32, %arg0 : i32, i32
  }
  func.func @transform_1(%arg0: i32) -> (i32, i32) {
    %c0_i32 = arith.constant 0 : i32
    %c0_i32_0 = arith.constant 0 : i32
    return %c0_i32, %arg0 : i32, i32
  }
  func.func @transform_2(%arg0: i32) -> (i32, i32, i32) {
    %c0_i32 = arith.constant 0 : i32
    %c0_i32_0 = arith.constant 0 : i32
    %c0_i32_1 = arith.constant 0 : i32
    return %arg0, %c0_i32, %c0_i32_0 : i32, i32, i32
  }
}

</mosaic_0001>

<bundles_post_ra>
// kernel: tpu_custom_call.1
= control target key start
LH: loop header
LB: loop body
LE: loop exit
PB: predicated region body
PF: predicated region fallthrough
CT: control target
= control target key end

     0   :  { %7 = vsyncpa [#allocation3], 0  ;;  %s345_s0 = inlined_call_operand.hbm [shape: f32[10,128], index: 0, kind: input, shape index: {}]   ;;  %s346_s1 = inlined_call_operand.hbm [shape: f32[10,128], index: 1, kind: input, shape index: {}]   ;;  %s347_s2 = inlined_call_operand.hbm [shape: f32[1,8,128], index: 2, kind: output, shape index: {}]  }
   0x1   :  { %8 = vsyncpa [#allocation6], 0 }
   0x2   :  { %9 = vsyncpa [#allocation4], 0  ;;  %s266_s9 = smov [#allocation2]  }
   0x3   :  { %s15_s10 = sshll.u32 %s266_s9, 4  ;;  %s16_s10 = int_to_ptr.vmem [resolvable:$true] %s15_s10 }
   0x4   :  { %s208_s11 = scalar_lea.vmem %s16_s10, 256  ;;  %p213_p1 = scmp.lt.s32.totalorder %s16_s10, %s16_s10 }
   0x5   :  { %p209_p0 = scmp.ne.s32.totalorder %s16_s10, %s208_s11  ;;  %p214_p2 = scmp.lt.s32.totalorder %s208_s11, %s208_s11 }
   0x7   :  { %p215_p3 = por %p214_p2, %p213_p1 }
   0x9   :  { %p216_p4 = pnand %p215_p3, %p209_p0 }
   0xb   :  { %219 = shalt.err (!%p216_p4)
}
   0xc   :  { %s267_s12 = smov 128   ;;  %s268_s13 = smov 8  }
   0xd   :  { %21 = dma.hbm_to_vmem [thread:$0]  %s345_s0, 256, %s16_s10, [#allocation3], %s267_s12, %s267_s12, %s268_s13  }
   0xe   :  { %s269_s16 = smov [#allocation5]  }
   0xf   :  { %s27_s17 = sshll.u32 %s269_s16, 4  ;;  %s28_s17 = int_to_ptr.vmem [resolvable:$true] %s27_s17 }
  0x10   :  { %s228_s18 = scalar_lea.vmem %s28_s17, 256  ;;  %p233_p6 = scmp.lt.s32.totalorder %s28_s17, %s28_s17 }
  0x11   :  { %p229_p5 = scmp.ne.s32.totalorder %s28_s17, %s228_s18  ;;  %p234_p7 = scmp.lt.s32.totalorder %s228_s18, %s228_s18 }
  0x13   :  { %p235_p8 = por %p234_p7, %p233_p6 }
  0x15   :  { %p236_p9 = pnand %p235_p8, %p229_p5 }
  0x17   :  { %239 = shalt.err (!%p236_p9)
}
  0x18   :  { %33 = dma.hbm_to_vmem [thread:$0]  %s346_s1, 256, %s28_s17, [#allocation6], %s267_s12, %s267_s12, %s268_s13  }
  0x19   :  { %260 = dma.done.wait [#allocation3], 256  }
  0x1a   :  { %261 = vsyncadd [#allocation3], 4294967040 }
  0x1b   :  { %262 = dma.done.wait [#allocation6], 256  }
  0x1c   :  { %263 = vsyncadd [#allocation6], 4294967040  ;;  %v294_v0 = vld [vmem:[#allocation2] sm:$0xff]  ;;  %v296_v1 = vld [vmem:[#allocation5] sm:$0xff]  ;;  %vm270_vm2 = vmmov 1   ;;  %vm52_vm4 = vcmask 1041408  }
  0x1d   :  { %v298_v2 = vld [vmem:[#allocation2 + $0x8] sm:$0x3]  ;;  %v300_v3 = vld [vmem:[#allocation5 + $0x8] sm:$0x3]  ;;  %vm44_vm0 = vcmp.ge.f32.partialorder %v296_v1, 1.0  ;;  %v271_v28 = vmov 0.0  }
  0x1e   :  { %vm45_vm1 = vcmp.ge.f32.partialorder %v300_v3, 1.0  ;;  %vm306_vm3 = vmxor %vm44_vm0, %vm270_vm2  ;;  %v174_v31 = vsel %vm44_vm0, 1.0, %v271_v28  ;;  %vm121_vm9 = vcmask 1040384   ;;  %s272_s1 = smov [#allocation7]  }
  0x1f   :  { %vm312_vm5 = vmxor %vm45_vm1, %vm270_vm2  ;;  %v62_v6 = vsel %vm306_vm3, %v294_v0, -inf  ;;  %v175_v29 = vsel %vm45_vm1, 1.0, %v271_v28  ;;  %s164_s21 = sshll.u32 %s272_s1, 4  ;;  %s165_s21 = int_to_ptr.vmem [resolvable:$true] %s164_s21 }
  0x20   :  { %v63_v7 = vsel %vm312_vm5, %v298_v2, -inf  ;;  %v53_v32 = vsel %vm52_vm4, %v175_v29, 0.0  ;;  %s240_s23 = scalar_lea.vmem %s165_s21, 128  ;;  %p245_p11 = scmp.lt.s32.totalorder %s165_s21, %s165_s21 }
  0x21   :  { %v64_v8 = vsel %vm52_vm4, %v63_v7, -inf  ;;  %v54_v35 = vadd.f32 %v174_v31, %v53_v32  ;;  %p241_p10 = scmp.ne.s32.totalorder %s165_s21, %s240_s23  ;;  %p246_p12 = scmp.lt.s32.totalorder %s240_s23, %s240_s23 }
  0x22   :  { %v65_v9 = vmax.f32 %v62_v6, %v64_v8 }
  0x23   :  { %v55_v38 = vrot.slane %v54_v35, 4  ;;  %p247_p13 = por %p246_p12, %p245_p11 }
  0x24   :  { %v66_v10 = vrot.slane %v65_v9, 4 }
  0x25   :  { %v56_v42 = vadd.f32 %v55_v38, %v54_v35  ;;  %p248_p0 = pnand %p247_p13, %p241_p10 }
  0x26   :  { %v67_v11 = vmax.f32 %v65_v9, %v66_v10 }
  0x27   :  { %v57_v43 = vrot.slane %v56_v42, 2 }
  0x28   :  { %v68_v12 = vrot.slane %v67_v11, 2 }
  0x29   :  { %v58_v44 = vadd.f32 %v57_v43, %v56_v42 }
  0x2a   :  { %v69_v13 = vmax.f32 %v67_v11, %v68_v12 }
  0x2b   :  { %v59_v45 = vrot.slane %v58_v44, 1 }
  0x2c   :  { %v70_v14 = vrot.slane %v69_v13, 1 }
  0x2d   :  { %v60_v49 = vadd.f32 %v59_v45, %v58_v44 }
  0x2e   :  { %v71_v15 = vmax.f32 %v69_v13, %v70_v14 }
  0x2f   :  { %v114_v55 = vmax.f32 %v60_v49, 1.0  ;;  %v61_v4 = vsub.f32 10.0, %v60_v49  ;;  %vm117_vm6 = vcmp.gt.f32.partialorder %v60_v49, 0.0 }
  0x30   :  { %v72_v16 = vsub.f32 %v294_v0, %v71_v15  ;;  %v73_v17 = vsub.f32 %v298_v2, %v71_v15 }
  0x31   :  { %vm118_vm7 = vcmp.gt.f32.partialorder %v61_v4, 0.0 }
  0x32   :  { %v176_v18 = vclamps-f32 %v72_v16, 85.0  ;;  %v177_v19 = vclamps-f32 %v73_v17, 85.0  ;;  %vm119_vm8 = vmand %vm117_vm6, %vm118_vm7 }
  0x33   :  { %v178_v3 = vsel %vm119_vm8, 1.0, %v271_v28 }
  0x34   :  { %v78_v20 = vmul.f32 1.442695, %v176_v18  ;;  %v80_v21 = vmul.f32 1.442695, %v177_v19  ;;  %v134_v10 = vsel %vm121_vm9, %v178_v3, 0.0 }
  0x36   :  { %190 = vpow2.f32 %v78_v20 }
  0x37   :  { %192 = vpow2.f32 %v80_v21 }
  0x43   :  { %v191_v22 = vpop.eup %190 }
  0x44   :  { %v193_v23 = vpop.eup %192  ;;  %v82_v24 = vsel %vm306_vm3, %v191_v22, 0.0 }
  0x45   :  { %v83_v25 = vsel %vm312_vm5, %v193_v23, 0.0 }
  0x46   :  { %v84_v26 = vsel %vm52_vm4, %v83_v25, 0.0  ;;  %v144_v25 = vlaneseq }
  0x47   :  { %v85_v27 = vadd.f32 %v84_v26, %v82_v24 }
  0x48   :  { %v145_v26 = vshrl.u32 %v144_v25, 7 }
  0x49   :  { %v86_v30 = vrot.slane %v85_v27, 4 }
  0x4a   :  { %vm148_vm10 = vcmp.eq.s32.totalorder %v145_v26, 0 }
  0x4b   :  { %v87_v33 = vadd.f32 %v86_v30, %v85_v27  ;;  %v147_v27 = vand.u32 127, %v144_v25 }
  0x4d   :  { %v88_v34 = vrot.slane %v87_v33, 2  ;;  %vm151_vm11 = vcmp.eq.s32.totalorder %v147_v27, 1  ;;  %vm149_vm12 = vcmp.eq.s32.totalorder %v147_v27, 0 }
  0x4e   :  { %vm152_vm13 = vmand %vm148_vm10, %vm151_vm11 }
  0x4f   :  { %v89_v36 = vadd.f32 %v88_v34, %v87_v33  ;;  %vm150_vm14 = vmand %vm148_vm10, %vm149_vm12 }
  0x51   :  { %v90_v37 = vrot.slane %v89_v36, 1 }
  0x53   :  { %v91_v39 = vadd.f32 %v90_v37, %v89_v36 }
  0x55   :  { %v92_v40 = vadd.f32 %v191_v22, %v91_v39  ;;  %v93_v41 = vadd.f32 %v193_v23, %v91_v39 }
  0x57   :  { %194 = vlog2.f32 %v92_v40 }
  0x58   :  { %196 = vlog2.f32 %v93_v41 }
  0x59   :  { %198 = vrcp.f32 %v114_v55 }
  0x64   :  { %v195_v46 = vpop.eup %194 }
  0x65   :  { %v197_v47 = vpop.eup %196  ;;  %v95_v48 = vmul.f32 0.6931472, %v195_v46 }
  0x66   :  { %v97_v50 = vmul.f32 0.6931472, %v197_v47 }
  0x67   :  { %v98_v51 = vadd.f32 %v95_v48, %v71_v15 }
  0x68   :  { %v99_v52 = vadd.f32 %v97_v50, %v71_v15 }
  0x69   :  { %v100_v53 = vsub.f32 %v98_v51, %v294_v0 }
  0x6a   :  { %v101_v54 = vsub.f32 %v99_v52, %v298_v2  ;;  %v199_v2 = vpop.eup %198 }
  0x6b   :  { %v102_v56 = vmax.f32 %v100_v53, 0.0 }
  0x6c   :  { %v103_v57 = vmax.f32 %v101_v54, 0.0 }
  0x6d   :  { %v104_v58 = vsel %vm44_vm0, %v102_v56, 0.0 }
  0x6e   :  { %v105_v59 = vsel %vm45_vm1, %v103_v57, 0.0 }
  0x6f   :  { %v106_v60 = vsel %vm52_vm4, %v105_v59, 0.0 }
  0x70   :  { %v107_v61 = vadd.f32 %v106_v60, %v104_v58 }
  0x72   :  { %v108_v62 = vrot.slane %v107_v61, 4 }
  0x74   :  { %v109_v63 = vadd.f32 %v108_v62, %v107_v61 }
  0x76   :  { %v110_v5 = vrot.slane %v109_v63, 2 }
  0x78   :  { %v111_v0 = vadd.f32 %v110_v5, %v109_v63 }
  0x7a   :  { %v112_v6 = vrot.slane %v111_v0, 1 }
  0x7c   :  { %v113_v7 = vadd.f32 %v112_v6, %v111_v0 }
  0x7e   :  { %v116_v1 = vmul.f32 %v199_v2, %v113_v7 }
  0x80   :  { %v120_v8 = vsel %vm119_vm8, %v116_v1, 0.0 }
  0x81   :  { %v122_v9 = vsel %vm121_vm9, %v120_v8, 0.0 }
  0x82   :  { %123 = vadd.xlane.f32.xlu0 %v122_v9 }
  0x86   :  { %135 = vadd.xlane.f32.xlu0 %v134_v10 }
 0x10b   :  { %v124_v11 = vpop.xlane.xlu0 %123 }
 0x10c   :  { %v125_v12 = vrot.slane %v124_v11, 4 }
 0x10e   :  { %v126_v13 = vadd.f32 %v125_v12, %v124_v11 }
 0x10f   :  { %v136_v14 = vpop.xlane.xlu0 %135 }
 0x110   :  { %v127_v15 = vrot.slane %v126_v13, 2  ;;  %v137_v16 = vrot.slane %v136_v14, 4 }
 0x112   :  { %v138_v17 = vadd.f32 %v137_v16, %v136_v14  ;;  %v128_v18 = vadd.f32 %v127_v15, %v126_v13 }
 0x114   :  { %v139_v19 = vrot.slane %v138_v17, 2  ;;  %v129_v20 = vrot.slane %v128_v18, 1 }
 0x116   :  { %v140_v21 = vadd.f32 %v139_v19, %v138_v17  ;;  %v130_v22 = vadd.f32 %v129_v20, %v128_v18 }
 0x118   :  { %179 = vpush %v130_v22  ;;  %v141_v23 = vrot.slane %v140_v21, 1 }
 0x11a   :  { %v142_v24 = vadd.f32 %v141_v23, %v140_v21 }
 0x11c   :  { %181 = vpush %v142_v24 }
 0x149   :  { %s180_s0 = spop %179 }
 0x14a   :  { %v155_v29 = vstv %s180_s0 }
 0x14d   :  { %s182_s22 = spop %181 }
 0x14e   :  { %v153_v28 = vstv %s182_s22 }
 0x14f   :  { %v154_v30 = vsel %vm152_vm13, %v153_v28, 0.0 }
 0x150   :  { %v156_v31 = vsel %vm150_vm14, %v155_v29, %v154_v30 }
 0x151   :  { %157 = vst [vmem:[#allocation7] sm:$0xff] %v156_v31 }
 0x152   :  { %251 = shalt.err (!%p248_p0)
}
 0x153   :  { %167 = dma.vmem_to_hbm [thread:$0]  %s165_s21, 128, %s347_s2, [#allocation4]  }
 0x154   :  { %264 = dma.done.wait [#allocation4], 128  }
 0x155   :  { %265 = vsyncadd [#allocation4], 4294967168 }
 0x156   :  { %171 = vsyncpa [#allocation3], 1 }
 0x157   :  { %172 = vsyncpa [#allocation6], 1 }
 0x158   :  { %173 = vsyncpa [#allocation4], 1 }

</bundles_post_ra>
